<compile_context>
chip_gen: v6e
topology: v6e:2x2x1
jax: 0.10.0
libtpu: 0.0.40
codegen_flags: <defaults>
</compile_context>

<pallas_src>
import functools

import jax
import jax.numpy as jnp
from jax.experimental import pallas as pl
from jax.experimental.pallas import tpu as pltpu

_INV255 = 1.0 / 255.0  # Python float -> jaxpr literal (NOT a captured array constant)


@functools.lru_cache(maxsize=1)
def _byte0_shifts():
    """Shift amounts so packed-int32 byte extraction matches image[..., c] exactly,
    independent of the backend's bitcast byte order."""
    probe = jax.lax.bitcast_convert_type(
        jnp.array([1, 0, 0, 0], dtype=jnp.uint8), jnp.int32
    )
    byte0_is_lsb = int(jax.device_get(probe)) == 1
    return (0, 8, 16, 24) if byte0_is_lsb else (24, 16, 8, 0)


def _tpu_vmem_capacity_bytes():
    try:
        return int(pltpu.get_tpu_info().vmem_capacity_bytes)
    except Exception:
        return 64 << 20  # conservative (v7x per-TC physical VMEM)


def _vmem_budget_and_limit():
    """(per-step double-buffer budget, scoped vmem_limit_bytes) for this generation."""
    cap = _tpu_vmem_capacity_bytes()
    budget = min(32 << 20 if cap >= (128 << 20) else 20 << 20, cap // 3)
    limit = int(min(48 << 20, (cap * 3) // 4))
    return int(budget), limit


def _pick_block_rows(rows, per_row_bytes, budget):
    """Sublane-aligned row tile: fits the VMEM budget, prefers a divisor of `rows`
    (unmasked full-tile stores), and leaves >= 2 grid steps for megacore sharding."""
    rows = int(rows)
    if rows <= 8:
        return rows
    max_th = max(8, (budget // max(1, per_row_bytes)) // 8 * 8)
    half = max(8, ((rows + 1) // 2) // 8 * 8)  # force >= 2 grid steps
    th = int(min(max_th, half, rows))
    th = max(8, th - (th % 8))
    for cand in range(th, 7, -8):  # prefer an exact divisor of rows
        if rows % cand == 0:
            return cand
    return th


def _make_packed_kernel(shifts, n_out, out_dtype):
    def kernel(packed_ref, out_ref):
        # packed_ref: (TH, WIDTH) int32 — four uint8 channel bytes per word (lane-dense).
        # out_ref:    (n_out, TH, WIDTH) out_dtype.
        x = packed_ref[...]
        for c in range(n_out):
            byte = (x >> shifts[c]) & 0xFF  # arithmetic shift OK: low 8 bits are masked
            out_ref[c, :, :] = (byte.astype(jnp.float32) * _INV255).astype(out_dtype)

    return kernel


def _generic_kernel(img_ref, out_ref):
    # Rare fallback (C > 4): lane-sparse uint8 load + XLU transpose. Correct, not fast.
    x = img_ref[...].astype(jnp.float32) * _INV255
    out_ref[...] = jnp.transpose(x, (2, 0, 1)).astype(out_ref.dtype)


def to_tensor_multi_inputs(image, targets, *, block_rows=None, out_dtype=jnp.float32):
    """JAX/Pallas equivalent of ToTensorMultiInputs.forward(image, targets)."""
    assert image.dtype == jnp.uint8, "ToTensor path expects a uint8 HWC image"
    H, W, C = image.shape
    out_bytes = jnp.dtype(out_dtype).itemsize
    budget, vmem_limit = _vmem_budget_and_limit()
    cparams = pltpu.CompilerParams(
        dimension_semantics=("parallel",), vmem_limit_bytes=vmem_limit
    )

    if C <= 4:
        # Pad to 4 channels (free for C==4) so the contiguous HWC uint8 rows bitcast to
        # one int32 per pixel: input becomes lane-dense; the channel split moves onto
        # cheap VPU shifts/masks and HWC->CHW is pure DMA addressing.
        image4 = image if C == 4 else jnp.pad(image, ((0, 0), (0, 0), (0, 4 - C)))
        packed = jax.lax.bitcast_convert_type(image4, jnp.int32)  # (H, W) int32

        if (H * W) % 128 == 0:
            # Fully lane-dense view: avoids masked vst / lane padding for W % 128 != 0.
            rows, width = (H * W) // 128, 128
            packed = packed.reshape(rows, width)  # free, contiguous
        else:
            rows, width = H, W

        per_row = 2 * width * (4 + C * out_bytes)  # dbl-buffered int32 in + C planes out
        th = (
            int(block_rows)
            if block_rows is not None
            else _pick_block_rows(rows, per_row, budget)
        )
        cost = pl.CostEstimate(
            flops=3 * rows * width * C,
            transcendentals=0,
            bytes_accessed=rows * width * 4 + C * rows * width * out_bytes,
        )
        out = pl.pallas_call(
            _make_packed_kernel(_byte0_shifts(), C, out_dtype),
            grid=(pl.cdiv(rows, th),),
            in_specs=[pl.BlockSpec((th, width), lambda i: (i, 0))],
            out_specs=pl.BlockSpec((C, th, width), lambda i: (0, i, 0)),
            out_shape=jax.ShapeDtypeStruct((C, rows, width), out_dtype),
            compiler_params=cparams,
            cost_estimate=cost,
        )(packed)
        out = out.reshape(C, H, W)  # free, contiguous
    else:
        # TODO(synk): C > 4 is not an image ToTensor case; keep a correct (slow) fallback.
        per_row = 2 * W * (128 + 4 * C) + 4 * 128 * W
        th = (
            int(block_rows)
            if block_rows is not None
            else _pick_block_rows(H, per_row, budget)
        )
        cost = pl.CostEstimate(
            flops=2 * H * W * C,
            transcendentals=0,
            bytes_accessed=H * W * C * (1 + out_bytes),
        )
        out = pl.pallas_call(
            _generic_kernel,
            grid=(pl.cdiv(H, th),),
            in_specs=[pl.BlockSpec((th, W, C), lambda i: (i, 0, 0))],
            out_specs=pl.BlockSpec((C, th, W), lambda i: (0, i, 0)),
            out_shape=jax.ShapeDtypeStruct((C, H, W), out_dtype),
            compiler_params=cparams,
            cost_estimate=cost,
        )(image)

    # targets are returned untouched, exactly like the PyTorch module.
    return out, targets


if __name__ == "__main__":
    key = jax.random.PRNGKey(0)
    k1, k2, k3, kt = jax.random.split(key, 4)
    targets = jax.random.randint(kt, (2,), 0, 10, dtype=jnp.int32)

    def ref(img):
        return jnp.transpose(img.astype(jnp.float32) / 255.0, (2, 0, 1))

    # 1) C == 4: packed-int32, fully lane-dense flattened path (H*W % 128 == 0), grid=2.
    H, W, C = 32, 128, 4
    img4 = jax.random.randint(k1, (H, W, C), 0, 256, dtype=jnp.int32).astype(jnp.uint8)
    out4, tgt4 = to_tensor_multi_inputs(img4, targets)
    jax.block_until_ready(out4)
    jax.block_until_ready(tgt4)
    assert out4.shape == (C, H, W) and out4.dtype == jnp.float32
    assert jnp.allclose(out4, ref(img4), atol=1e-6)
    assert jnp.array_equal(tgt4, targets)

    # 2) C == 3 (RGB): padded to 4 channels, same packed fast path, 3 planes written.
    H, W, C = 16, 16, 3
    img3 = jax.random.randint(k2, (H, W, C), 0, 256, dtype=jnp.int32).astype(jnp.uint8)
    out3, tgt3 = to_tensor_multi_inputs(img3, targets)
    jax.block_until_ready(out3)
    assert out3.shape == (C, H, W) and out3.dtype == jnp.float32
    assert jnp.allclose(out3, ref(img3), atol=1e-6)
    assert jnp.array_equal(tgt3, targets)

    # 3) Width not a multiple of 128 and row count not divisible by the tile height
    #    (exercises the partial last block / masked-store epilogue).
    H, W, C = 20, 24, 3
    img_odd = jax.random.randint(k3, (H, W, C), 0, 256, dtype=jnp.int32).astype(jnp.uint8)
    out_odd, tgt_odd = to_tensor_multi_inputs(img_odd, targets)
    jax.block_until_ready(out_odd)
    assert out_odd.shape == (C, H, W) and out_odd.dtype == jnp.float32
    assert jnp.allclose(out_odd, ref(img_odd), atol=1e-6)
    assert jnp.array_equal(tgt_odd, targets)

    print("KERNEL_OK")
</pallas_src>

<mosaic_0001>
module attributes {stable_mosaic.version = 11 : i64} {
  func.func @kernel(%arg0: i32, %arg1: memref<16x128xi32, #tpu.memory_space<vmem>>, %arg2: memref<4x16x128xf32, #tpu.memory_space<vmem>>) attributes {dimension_semantics = [#tpu.dimension_semantics<parallel>], iteration_bounds = array<i64: 2>, scalar_prefetch = 0 : i64, scratch_operands = 0 : i64, tpu.core_type = #tpu.core_type<tc>, window_params = [{transform_indices = @transform_0, window_bounds = array<i64: 16, 128>}, {transform_indices = @transform_1, window_bounds = array<i64: 4, 16, 128>}]} {
    %c0 = arith.constant 0 : index
    %c0_0 = arith.constant 0 : index
    %0 = vector.load %arg1[%c0, %c0_0] : memref<16x128xi32, #tpu.memory_space<vmem>>, vector<16x128xi32>
    %c0_i32 = arith.constant 0 : i32
    %1 = vector.broadcast %c0_i32 : i32 to vector<16x128xi32>
    %2 = arith.shrsi %0, %1 : vector<16x128xi32>
    %c255_i32 = arith.constant 255 : i32
    %3 = vector.broadcast %c255_i32 : i32 to vector<16x128xi32>
    %4 = arith.andi %2, %3 : vector<16x128xi32>
    %5 = arith.sitofp %4 : vector<16x128xi32> to vector<16x128xf32>
    %cst = arith.constant 0.00392156886 : f32
    %6 = vector.broadcast %cst : f32 to vector<16x128xf32>
    %7 = arith.mulf %5, %6 : vector<16x128xf32>
    %c0_1 = arith.constant 0 : index
    %c0_2 = arith.constant 0 : index
    %c0_3 = arith.constant 0 : index
    %8 = vector.load %arg2[%c0_1, %c0_2, %c0_3] : memref<4x16x128xf32, #tpu.memory_space<vmem>>, vector<1x16x128xf32>
    %9 = vector.shape_cast %8 : vector<1x16x128xf32> to vector<16x128xf32>
    %10 = vector.shape_cast %7 : vector<16x128xf32> to vector<1x16x128xf32>
    tpu.vector_store %arg2[%c0_1, %c0_2, %c0_3], %10 {strides = array<i32>} : memref<4x16x128xf32, #tpu.memory_space<vmem>>, vector<1x16x128xf32>,
    %c8_i32 = arith.constant 8 : i32
    %11 = vector.broadcast %c8_i32 : i32 to vector<16x128xi32>
    %12 = arith.shrsi %0, %11 : vector<16x128xi32>
    %c255_i32_4 = arith.constant 255 : i32
    %13 = vector.broadcast %c255_i32_4 : i32 to vector<16x128xi32>
    %14 = arith.andi %12, %13 : vector<16x128xi32>
    %15 = arith.sitofp %14 : vector<16x128xi32> to vector<16x128xf32>
    %cst_5 = arith.constant 0.00392156886 : f32
    %16 = vector.broadcast %cst_5 : f32 to vector<16x128xf32>
    %17 = arith.mulf %15, %16 : vector<16x128xf32>
    %c1 = arith.constant 1 : index
    %c0_6 = arith.constant 0 : index
    %c0_7 = arith.constant 0 : index
    %18 = vector.load %arg2[%c1, %c0_6, %c0_7] : memref<4x16x128xf32, #tpu.memory_space<vmem>>, vector<1x16x128xf32>
    %19 = vector.shape_cast %18 : vector<1x16x128xf32> to vector<16x128xf32>
    %20 = vector.shape_cast %17 : vector<16x128xf32> to vector<1x16x128xf32>
    tpu.vector_store %arg2[%c1, %c0_6, %c0_7], %20 {strides = array<i32>} : memref<4x16x128xf32, #tpu.memory_space<vmem>>, vector<1x16x128xf32>,
    %c16_i32 = arith.constant 16 : i32
    %21 = vector.broadcast %c16_i32 : i32 to vector<16x128xi32>
    %22 = arith.shrsi %0, %21 : vector<16x128xi32>
    %c255_i32_8 = arith.constant 255 : i32
    %23 = vector.broadcast %c255_i32_8 : i32 to vector<16x128xi32>
    %24 = arith.andi %22, %23 : vector<16x128xi32>
    %25 = arith.sitofp %24 : vector<16x128xi32> to vector<16x128xf32>
    %cst_9 = arith.constant 0.00392156886 : f32
    %26 = vector.broadcast %cst_9 : f32 to vector<16x128xf32>
    %27 = arith.mulf %25, %26 : vector<16x128xf32>
    %c2 = arith.constant 2 : index
    %c0_10 = arith.constant 0 : index
    %c0_11 = arith.constant 0 : index
    %28 = vector.load %arg2[%c2, %c0_10, %c0_11] : memref<4x16x128xf32, #tpu.memory_space<vmem>>, vector<1x16x128xf32>
    %29 = vector.shape_cast %28 : vector<1x16x128xf32> to vector<16x128xf32>
    %30 = vector.shape_cast %27 : vector<16x128xf32> to vector<1x16x128xf32>
    tpu.vector_store %arg2[%c2, %c0_10, %c0_11], %30 {strides = array<i32>} : memref<4x16x128xf32, #tpu.memory_space<vmem>>, vector<1x16x128xf32>,
    %c24_i32 = arith.constant 24 : i32
    %31 = vector.broadcast %c24_i32 : i32 to vector<16x128xi32>
    %32 = arith.shrsi %0, %31 : vector<16x128xi32>
    %c255_i32_12 = arith.constant 255 : i32
    %33 = vector.broadcast %c255_i32_12 : i32 to vector<16x128xi32>
    %34 = arith.andi %32, %33 : vector<16x128xi32>
    %35 = arith.sitofp %34 : vector<16x128xi32> to vector<16x128xf32>
    %cst_13 = arith.constant 0.00392156886 : f32
    %36 = vector.broadcast %cst_13 : f32 to vector<16x128xf32>
    %37 = arith.mulf %35, %36 : vector<16x128xf32>
    %c3 = arith.constant 3 : index
    %c0_14 = arith.constant 0 : index
    %c0_15 = arith.constant 0 : index
    %38 = vector.load %arg2[%c3, %c0_14, %c0_15] : memref<4x16x128xf32, #tpu.memory_space<vmem>>, vector<1x16x128xf32>
    %39 = vector.shape_cast %38 : vector<1x16x128xf32> to vector<16x128xf32>
    %40 = vector.shape_cast %37 : vector<16x128xf32> to vector<1x16x128xf32>
    tpu.vector_store %arg2[%c3, %c0_14, %c0_15], %40 {strides = array<i32>} : memref<4x16x128xf32, #tpu.memory_space<vmem>>, vector<1x16x128xf32>,
    return
  }
  func.func @transform_0(%arg0: i32) -> (i32, i32) {
    %c0_i32 = arith.constant 0 : i32
    %c0_i32_0 = arith.constant 0 : i32
    return %arg0, %c0_i32 : i32, i32
  }
  func.func @transform_1(%arg0: i32) -> (i32, i32, i32) {
    %c0_i32 = arith.constant 0 : i32
    %c0_i32_0 = arith.constant 0 : i32
    %c0_i32_1 = arith.constant 0 : i32
    return %c0_i32, %arg0, %c0_i32_0 : i32, i32, i32
  }
}

</mosaic_0001>

<bundles_post_ra>
// kernel: tpu_custom_call.1
= control target key start
LH: loop header
LB: loop body
LE: loop exit
PB: predicated region body
PF: predicated region fallthrough
CT: control target
= control target key end

     0   :  { %6 = vsyncpa [#allocation3], 0  ;;  %s606_s0 = inlined_call_operand.hbm [shape: s32[32,128], index: 0, kind: input, shape index: {}]   ;;  %s607_s1 = inlined_call_operand.hbm [shape: f32[4,32,128], index: 1, kind: output, shape index: {}]  }
   0x1   :  { %8 = vsyncpa [#allocation3 + $0x1], 0 }
   0x2   :  { %9 = vsyncpa [#allocation4], 0 }
   0x3   :  { %11 = vsyncpa [#allocation4 + $0x1], 0  ;;  %s463_s6 = smov 0   ;;  %s465_s7 = smov 0  }
   0x4   :  { %s467_s8 = smov 0   ;;  %s469_s9 = smov 0  }
   0x5 LB: > { %s484_s10 = sadd.s32 4294967295, %s441_s9   ;;  %s290_s11 = sadd.s32 4294967294, %s441_s9   ;;  %s441_s9 = sphi %s469_s9, %s622_s9   ;;  %s437_s8 = sphi %s467_s8, %s621_s8   ;;  %s433_s7 = sphi %s465_s7, %s620_s7   ;;  %s429_s6 = sphi %s463_s6, %s619_s6  }
   0x6   : > { %s488_s12 = sadd.s32 1, %s441_s9   ;;  %s24_s13 = sadd.s32 1, %s437_s8 }
   0x7   : > { %s21_s14 = ssub.s32 %s441_s9, %s488_s12  ;;  %p31_p0 = scmp.ne.s32.totalorder %s437_s8, %s433_s7 }
   0x8   : > { %p22_p1 = scmp.eq.s32.totalorder %s21_s14, 0  ;;  %p32_p2 = scmp.eq.s32.totalorder %s441_s9, 0 }
   0x9   : > { %p37_p3 = scmp.ne.s32.totalorder %s433_s7, %s429_s6  ;;  %p38_p4 = scmp.eq.s32.totalorder %s484_s10, 0 }
   0xa   : > { %s500_s15 = scalar_select %p22_p1, %s437_s8, %s24_s13  }
   0xb   : > { %p502_p5 = por %p32_p2, %p31_p0  ;;  %p506_p6 = por %p38_p4, %p37_p3 }
   0xc   : > { %p61_p7 = scmp.eq.s32.totalorder %s484_s10, 1  ;;  %p67_p8 = scmp.eq.s32.totalorder %s290_s11, 1 }
   0xd   : > { %s611_s17 = scalar_select %p506_p6, 1, 0 }
   0xe   : > { %p332_p10 = scmp.lt.s32.totalorder %s441_s9, 2  ;;  %p513_p11 = por %p61_p7, %p31_p0 }
   0xf   : > { %p517_p12 = por %p67_p8, %p37_p3  ;;  %s87_s20 = sand.u32 1, %s437_s8  }
  0x10   : > { %s612_s18 = scalar_select %p513_p11, 1, 0 }
  0x11   : > { %s613_s19 = scalar_select %p517_p12, 1, 0 }
  0x12   : > { %s312_s21 = sshll.u32 %s441_s9, 8  ;;  %s293_s22 = sshll.u32 %s87_s20, 4 }
  0x13   : > { %s526_s25 = scalar_lea.hbm %s606_s0, %s312_s21  ;;  %s91_s26 = scalar_lea.vmem [#allocation2], %s293_s22 }
  0x14   : > { %s98_s27 = sshll.u32 %s91_s26, 4  ;;  %p530_p13 = pnand %p332_p10, %p502_p5  ;;  %s534_s27 = int_to_ptr.vmem [resolvable:$true] %s98_s27 }
  0x15   : > { %s536_s29 = scalar_lea.sflag [#allocation3], %s87_s20  ;;  %s375_s30 = scalar_lea.hbm %s526_s25, 256 }
  0x16   : > { %p376_p0 = scmp.ne.s32.totalorder %s526_s25, %s375_s30  ;;  %p377_p1 = pneg %p530_p13 }
  0x17   : > { %s380_s4 = scalar_lea.hbm %s606_s0, 512  ;;  %p381_p4 = scmp.lt.s32.totalorder %s526_s25, %s606_s0 }
  0x18   : > { %p378_p2 = pnand %p377_p1, %p376_p0  ;;  %p382_p5 = scmp.lt.s32.totalorder %s380_s4, %s375_s30 }
  0x1a   : > { %p379_p3 = pneg %p378_p2  ;;  %p383_p7 = por %p382_p5, %p381_p4 }
  0x1c   : > { %p384_p8 = pnand %p383_p7, %p379_p3 }
  0x1e   : > { %387 = shalt.err (!%p384_p8)
}
  0x1f   : > { %s388_s13 = scalar_lea.vmem %s534_s27, 256  ;;  %s443_s14 = smov [#allocation2]  }
  0x20   : > { %p389_p10 = scmp.ne.s32.totalorder %s534_s27, %s388_s13  ;;  %s393_s16 = sshll.u32 %s443_s14, 4  ;;  %s394_s16 = int_to_ptr.vmem [resolvable:$false] %s393_s16 }
  0x21   : > { %s395_s20 = scalar_lea.vmem %s394_s16, 512  ;;  %p396_p2 = scmp.lt.s32.totalorder %s534_s27, %s394_s16 }
  0x22   : > { %p391_p9 = pnand %p389_p10, %p377_p1  ;;  %p397_p12 = scmp.lt.s32.totalorder %s395_s20, %s388_s13 }
  0x24   : > { %p392_p0 = pneg %p391_p9  ;;  %p398_p11 = por %p397_p12, %p396_p2 }
  0x26   : > { %p399_p6 = pnand %p398_p11, %p392_p0 }
  0x28   : > { %402 = shalt.err (!%p399_p6)
}
  0x29   : > { %s444_s21 = smov 128   ;;  %s445_s22 = smov 8  }
  0x2a   : > { %327 = dma.hbm_to_vmem [thread:$0]  (!%p530_p13), %s526_s25, 256, %s534_s27, %s536_s29, %s444_s21, %s444_s21, %s445_s22  }
  0x2b   : > { %p296_p9 = scmp.ge.s32.totalorder %s441_s9, 1  ;;  %p106_p1 = scmp.lt.s32.totalorder %s441_s9, 3 }
  0x2d   : > { %p107_p3 = pnand %p296_p9, %p106_p1 }
  0x2e   : > { %s560_s23 = sand.u32 (!%p107_p3), 1, %s433_s7   ;;  %p615_p6 = scmp.ne.s32.totalorder (!%p107_p3), %s611_s17, 0 }
  0x2f   : > { %110 = sbr.rel (%p107_p3) target bundleno = 75 (0x4b), region = 24  ;;  %s297_s24 = sshll.u32 (!%p107_p3), %s560_s23, 4 }
  0x30   : > { %s113_s26 = scalar_lea.sflag (!%p107_p3), [#allocation3], %s560_s23  ;;  %s116_s30 = scalar_lea.vmem (!%p107_p3), [#allocation2], %s297_s24 }
  0x34   : > { %420 = dma.done.wait (%p615_p6), %s113_s26, 256  }
  0x35   : > { %422 = vsyncadd (%p615_p6), %s113_s26, 4294967040  ;;  %v137_v0 = vld [vmem:[%s116_s30] sm:$0xff]  ;;  %v138_v1 = vld [vmem:[%s116_s30 + $0x8] sm:$0xff]  ;;  %s298_s25 = sshll.u32 %s560_s23, 6  ;;  %s181_s27 = scalar_lea.sflag [#allocation4], %s560_s23 }
  0x36   : > { %v139_v2 = vand.u32 255, %v137_v0  ;;  %v140_v3 = vand.u32 255, %v138_v1  ;;  %v147_v4 = vshra.s32 %v137_v0, 8  ;;  %v148_v5 = vshra.s32 %v138_v1, 8  ;;  %s134_s17 = scalar_lea.vmem [#allocation5], %s298_s25 }
  0x37   : > { %v158_v6 = vshra.s32 %v137_v0, 16  ;;  %v159_v7 = vshra.s32 %v138_v1, 16  ;;  %v303_v8 = vshrl.u32 %v137_v0, 24  ;;  %v304_v9 = vshrl.u32 %v138_v1, 24 }
  0x38   : > { %v141_v10 = vcvt.s32.f32 %v139_v2  ;;  %v142_v11 = vcvt.s32.f32 %v140_v3  ;;  %v149_v12 = vand.u32 255, %v147_v4  ;;  %v150_v13 = vand.u32 255, %v148_v5 }
  0x39   : > { %v160_v14 = vand.u32 255, %v158_v6  ;;  %v161_v15 = vand.u32 255, %v159_v7  ;;  %v173_v16 = vcvt.s32.f32 %v303_v8  ;;  %v174_v17 = vcvt.s32.f32 %v304_v9 }
  0x3a   : > { %v143_v18 = vmul.f32 0.003921569, %v141_v10  ;;  %v144_v19 = vmul.f32 0.003921569, %v142_v11  ;;  %v151_v20 = vcvt.s32.f32 %v149_v12  ;;  %v152_v21 = vcvt.s32.f32 %v150_v13 }
  0x3b   : > { %v162_v22 = vcvt.s32.f32 %v160_v14  ;;  %v163_v23 = vcvt.s32.f32 %v161_v15  ;;  %v175_v24 = vmul.f32 0.003921569, %v173_v16  ;;  %v176_v25 = vmul.f32 0.003921569, %v174_v17 }
  0x3c   : > { %145 = vst [vmem:[%s134_s17] sm:$0xff] %v143_v18  ;;  %146 = vst [vmem:[%s134_s17 + $0x8] sm:$0xff] %v144_v19  ;;  %v153_v26 = vmul.f32 0.003921569, %v151_v20  ;;  %v154_v27 = vmul.f32 0.003921569, %v152_v21 }
  0x3d   : > { %v164_v28 = vmul.f32 0.003921569, %v162_v22  ;;  %v165_v29 = vmul.f32 0.003921569, %v163_v23  ;;  %305 = vst [vmem:[%s134_s17 + $0x30] sm:$0xff] %v175_v24  ;;  %306 = vst [vmem:[%s134_s17 + $0x38] sm:$0xff] %v176_v25 }
  0x3e   : > { %299 = vst [vmem:[%s134_s17 + $0x10] sm:$0xff] %v153_v26  ;;  %300 = vst [vmem:[%s134_s17 + $0x18] sm:$0xff] %v154_v27 }
  0x3f   : > { %301 = vst [vmem:[%s134_s17 + $0x20] sm:$0xff] %v164_v28  ;;  %302 = vst [vmem:[%s134_s17 + $0x28] sm:$0xff] %v165_v29 }
  0x40   : > { %s313_s28 = sshll.u32 %s484_s10, 8  ;;  %s204_s29 = sshll.u32 %s134_s17, 4  ;;  %s205_s29 = int_to_ptr.vmem [resolvable:$true] %s204_s29 }
  0x41   : > { %s193_s4 = scalar_lea.hbm %s607_s1, %s313_s28  ;;  %s446_s5 = smov 256  }
  0x42   : > { %p616_p11 = scmp.ne.s32.totalorder %s612_s18, 0  ;;  %s447_s11 = smov 512  }
  0x43   : > { %s448_s13 = smov 2   ;;  %s449_s14 = smov 128  }
  0x44   : > { %316 = sst [smem:[#allocation7]] (%p616_p11), %s446_s5  ;;  %s450_s10 = smov 8  }
  0x45   : > { %317 = sst [smem:[#allocation7 + $0x1]] (%p616_p11), %s447_s11  ;;  %s451_s16 = smov 131072  }
  0x46   : > { %318 = sst [smem:[#allocation7 + $0x2]] (%p616_p11), %s448_s13  ;;  %s452_s20 = smov 0  }
  0x47   : > { %319 = sst [smem:[#allocation7 + $0x3]] (%p616_p11), %s449_s14 }
  0x48   : > { %320 = sst [smem:[#allocation7 + $0x4]] (%p616_p11), %s449_s14 }
  0x49   : > { %321 = sst [smem:[#allocation7 + $0x5]] (%p616_p11), %s450_s10 }
  0x4a   : > { %322 = dma.general (%p616_p11), %s205_s29, 1024, %s193_s4, %s181_s27, %s451_s16, [#allocation7], %s452_s20, 0  }
  0x4b PF: > { %s232_s21 = sand.u32 1, %s429_s6   ;;  %p617_p12 = scmp.ne.s32.totalorder %s613_s19, 0 }
  0x4c   : > { %p618_p13 = scmp.ge.s32.totalorder %s441_s9, 2  ;;  %s233_s22 = scalar_lea.sflag [#allocation4], %s232_s21 }
  0x4e   : > { %p329_p4 = pnand %p618_p13, %p617_p12 }
  0x50   : > { %p330_p5 = pneg %p329_p4 }
  0x52   : > { %424 = dma.done.wait (%p330_p5), %s233_s22, 1024  }
  0x53   : > { %426 = vsyncadd (%p330_p5), %s233_s22, 4294966272  ;;  %p14_p7 = scmp.ge.s32.totalorder %s488_s12, 4   ;;  %s619_s6 = smov %s433_s7 }
  0x54   : > { %s620_s7 = smov %s437_s8  ;;  %s621_s8 = smov %s500_s15 }
  0x55   : > { %s622_s9 = smov %s488_s12  ;;  %16 = sbr.rel (!%p14_p7) target bundleno = 5 (0x5), region = 77 }
  0x5a   :  { %238 = vsyncpa [#allocation3], 1 }
  0x5b   :  { %240 = vsyncpa [#allocation3 + $0x1], 1 }
  0x5c   :  { %241 = vsyncpa [#allocation4], 1 }
  0x5d   :  { %243 = vsyncpa [#allocation4 + $0x1], 1 }

</bundles_post_ra>
